<compile_context>
chip_gen: v6e
topology: v6e:2x2x1
jax: 0.10.0
libtpu: 0.0.40
codegen_flags: <defaults>
</compile_context>

<pallas_src>
import functools

import jax
import jax.numpy as jnp
from jax import lax
from jax.experimental import pallas as pl
from jax.experimental.pallas import tpu as pltpu


def _centers_kernel(tcol_ref, trow_ref, feats_ref, out_ref):
    """Per-sample class centers via one mask-weighted MXU matmul.

    feats_ref holds [modal1 | modal2 | 0.5*(modal1+modal2)] concatenated on the
    feature axis, so a single dot produces centersR / centersT / centers.
    """
    # int32 label comparison; row/col layouts come from the wrapper (no .T).
    mask = (tcol_ref[...] == trow_ref[...]).astype(jnp.float32)     # (tm, N)
    counts = jnp.sum(mask, axis=1, keepdims=True)                    # (tm, 1)
    w = mask * (1.0 / counts)            # N reciprocals + N^2 VPU multiplies
    out_ref[...] = jnp.dot(w.astype(feats_ref.dtype), feats_ref[...],
                           preferred_element_type=jnp.float32)       # (tm, 3D)


def _loss_kernel(cR_ref, cT_ref, c_ref, tcol_ref, trow_ref, out_ref, *, margin):
    """One (ti, tj) tile of the N x N contrastive-loss stage -> partial sum."""
    cR = cR_ref[...]                                                 # (ti, D) f32
    cT = cT_ref[...]                                                 # (ti, D) f32
    c = c_ref[...]                                                   # (tj, D) f32
    ti = cR.shape[0]

    mask = (tcol_ref[...] == trow_ref[...]).astype(jnp.float32)      # (ti, tj)

    # Row norms in their natural layouts (no transposes needed for broadcast).
    nR = jnp.sum(cR * cR, axis=1, keepdims=True)                     # (ti, 1)
    nT = jnp.sum(cT * cT, axis=1, keepdims=True)                     # (ti, 1)
    # ||centers_j||^2 directly in (1, tj) row layout via a tiny MXU matmul;
    # computed once and shared by both distance matrices (hoisted).
    dn = (((1,), (1,)), ((), ()))
    nC = lax.dot_general(jnp.ones((1, c.shape[1]), jnp.float32), c * c, dn,
                         preferred_element_type=jnp.float32)          # (1, tj)

    # Fused Gram matrices: [centersR ; centersT] @ centers^T in one MXU call,
    # contracting on the feature dim (no materialized transpose of centers).
    g = lax.dot_general(jnp.concatenate([cR, cT], axis=0), c, dn,
                        preferred_element_type=jnp.float32)            # (2ti, tj)
    g1 = g[:ti]
    g2 = g[ti:]

    sq1 = jnp.maximum(nR + nC - 2.0 * g1, 1e-12)   # clamped squared distance
    sq2 = jnp.maximum(nT + nC - 2.0 * g2, 1e-12)
    dd1 = jnp.sqrt(jnp.sqrt(sq1) + 1e-10)          # sqrt(dist + 1e-10)
    dd2 = jnp.sqrt(jnp.sqrt(sq2) + 1e-10)

    # Positive term uses the clamped squared distance directly
    # (== dist**2 of the torch code, avoiding the sqrt->square round trip).
    pos = mask * (sq1 + sq2)
    h1 = jnp.maximum(margin - dd1, 0.0)
    h2 = jnp.maximum(margin - dd2, 0.0)
    neg = (1.0 - mask) * (h1 * h1 + h2 * h2)
    tile_sum = jnp.sum(pos + neg)                  # single fused reduction

    # Lane-dense (8, 128) partial-sum block: value at [0, 0], zeros elsewhere.
    ii = lax.broadcasted_iota(jnp.int32, (8, 128), 0)
    jj = lax.broadcasted_iota(jnp.int32, (8, 128), 1)
    out_ref[...] = jnp.where((ii == 0) & (jj == 0), tile_sum, 0.0)


def cross_modal_contrastive_loss6(modal1, modal2, targets, margin=0.3):
    """JAX/Pallas equivalent of Cross_modal_ContrastiveLoss6.forward."""
    n, d = modal1.shape
    tgt_col = targets.reshape(n, 1).astype(jnp.int32)
    tgt_row = targets.reshape(1, n).astype(jnp.int32)

    # [modal1 | modal2 | 0.5*(modal1+modal2)] -> one fused center matmul.
    avg = (0.5 * (modal1.astype(jnp.float32) +
                  modal2.astype(jnp.float32))).astype(modal1.dtype)
    feats = jnp.concatenate([modal1, modal2, avg], axis=1)            # (n, 3d)

    # 128-aligned tiles when possible; fall back to full extent for small N.
    t = 128 if (n % 128 == 0) else n
    gi = n // t

    centers_all = pl.pallas_call(
        _centers_kernel,
        out_shape=jax.ShapeDtypeStruct((n, 3 * d), jnp.float32),
        grid=(gi,),
        in_specs=[
            pl.BlockSpec((t, 1), lambda i: (i, 0)),
            pl.BlockSpec((1, n), lambda i: (0, 0)),
            pl.BlockSpec((n, 3 * d), lambda i: (0, 0)),
        ],
        out_specs=pl.BlockSpec((t, 3 * d), lambda i: (i, 0)),
        compiler_params=pltpu.CompilerParams(dimension_semantics=("parallel",)),
    )(tgt_col, tgt_row, feats)

    # Wrapper-side slicing: pure layout plumbing, keeps the kernels simple.
    centersR = centers_all[:, :d]
    centersT = centers_all[:, d:2 * d]
    centers = centers_all[:, 2 * d:]

    partial = pl.pallas_call(
        functools.partial(_loss_kernel, margin=float(margin)),
        out_shape=jax.ShapeDtypeStruct((gi * 8, gi * 128), jnp.float32),
        grid=(gi, gi),
        in_specs=[
            pl.BlockSpec((t, d), lambda i, j: (i, 0)),
            pl.BlockSpec((t, d), lambda i, j: (i, 0)),
            pl.BlockSpec((t, d), lambda i, j: (j, 0)),
            pl.BlockSpec((t, 1), lambda i, j: (i, 0)),
            pl.BlockSpec((1, t), lambda i, j: (0, j)),
        ],
        out_specs=pl.BlockSpec((8, 128), lambda i, j: (i, j)),
        compiler_params=pltpu.CompilerParams(
            dimension_semantics=("parallel", "parallel")),
    )(centersR, centersT, centers, tgt_col, tgt_row)

    # mean(pos1+neg1) + mean(pos2+neg2) == (sum of all tile partials) / N^2
    return jnp.sum(partial) / jnp.float32(n * n)


def _reference(modal1, modal2, targets, margin=0.3):
    """Pure-JAX reference mirroring the PyTorch code (for validation)."""
    mask = (targets[:, None] == targets[None, :]).astype(jnp.float32)
    counts = mask.sum(axis=1, keepdims=True)
    w = mask / counts
    cR = w @ modal1
    cT = w @ modal2
    c = 0.5 * (cR + cT)

    def compute_dist(a, b):
        sa = jnp.sum(a * a, axis=1, keepdims=True)
        sb = jnp.sum(b * b, axis=1, keepdims=True)
        dd = sa + sb.T - 2.0 * a @ b.T
        return jnp.sqrt(jnp.clip(dd, 1e-12, None))

    d1 = compute_dist(cR, c)
    dd1 = jnp.sqrt(d1 + 1e-10)
    d2 = compute_dist(cT, c)
    dd2 = jnp.sqrt(d2 + 1e-10)

    def compute_loss(dsq, ds, lbl):
        pos = lbl * dsq ** 2
        neg = (1.0 - lbl) * jnp.clip(margin - ds, 0.0, None) ** 2
        return jnp.mean(pos + neg)

    return compute_loss(d1, dd1, mask) + compute_loss(d2, dd2, mask)


if __name__ == "__main__":
    key = jax.random.PRNGKey(0)
    k1, k2 = jax.random.split(key)

    N, D = 8, 32                       # batch of 8 samples, 32-dim features
    # Scale features down and use a larger margin so BOTH the positive and
    # the hinge (negative) branches are exercised.
    modal1 = 0.1 * jax.random.normal(k1, (N, D), dtype=jnp.float32)
    modal2 = 0.1 * jax.random.normal(k2, (N, D), dtype=jnp.float32)
    targets = jnp.array([0, 0, 1, 1, 2, 2, 3, 3], dtype=jnp.int32)
    margin = 1.0

    loss = cross_modal_contrastive_loss6(modal1, modal2, targets, margin=margin)
    loss = jax.block_until_ready(loss)

    ref = _reference(modal1, modal2, targets, margin=margin)
    assert jnp.allclose(loss, ref, rtol=1e-5, atol=1e-5), (loss, ref)

    print("KERNEL_OK")
</pallas_src>

<mosaic_0001>
module attributes {stable_mosaic.version = 11 : i64} {
  func.func @_centers_kernel(%arg0: i32, %arg1: memref<8x1xi32, #tpu.memory_space<vmem>>, %arg2: memref<1x8xi32, #tpu.memory_space<vmem>>, %arg3: memref<8x96xf32, #tpu.memory_space<vmem>>, %arg4: memref<8x96xf32, #tpu.memory_space<vmem>>) attributes {dimension_semantics = [#tpu.dimension_semantics<parallel>], iteration_bounds = array<i64: 1>, scalar_prefetch = 0 : i64, scratch_operands = 0 : i64, tpu.core_type = #tpu.core_type<tc>, window_params = [{transform_indices = @transform_0, window_bounds = array<i64: 8, 1>}, {pipeline_mode = #tpu.pipeline_mode<synchronous>, transform_indices = @transform_1, window_bounds = array<i64: 1, 8>}, {pipeline_mode = #tpu.pipeline_mode<synchronous>, transform_indices = @transform_2, window_bounds = array<i64: 8, 96>}, {transform_indices = @transform_3, window_bounds = array<i64: 8, 96>}]} {
    %c0 = arith.constant 0 : index
    %c0_0 = arith.constant 0 : index
    %0 = vector.load %arg1[%c0, %c0_0] : memref<8x1xi32, #tpu.memory_space<vmem>>, vector<8x1xi32>
    %c0_1 = arith.constant 0 : index
    %c0_2 = arith.constant 0 : index
    %1 = vector.load %arg2[%c0_1, %c0_2] : memref<1x8xi32, #tpu.memory_space<vmem>>, vector<1x8xi32>
    %2 = vector.broadcast %0 : vector<8x1xi32> to vector<8x8xi32>
    %3 = vector.broadcast %1 : vector<1x8xi32> to vector<8x8xi32>
    %4 = arith.cmpi eq, %2, %3 : vector<8x8xi32>
    %5 = arith.extui %4 : vector<8x8xi1> to vector<8x8xi32>
    %6 = arith.sitofp %5 : vector<8x8xi32> to vector<8x8xf32>
    %cst = arith.constant dense<0.000000e+00> : vector<8xf32>
    %7 = vector.multi_reduction <add>, %6, %cst [1] : vector<8x8xf32> to vector<8xf32>
    %8 = vector.shape_cast %7 : vector<8xf32> to vector<8x1xf32>
    %cst_3 = arith.constant 1.000000e+00 : f32
    %9 = vector.broadcast %cst_3 : f32 to vector<8x1xf32>
    %10 = arith.divf %9, %8 : vector<8x1xf32>
    %11 = vector.broadcast %10 : vector<8x1xf32> to vector<8x8xf32>
    %12 = arith.mulf %6, %11 : vector<8x8xf32>
    %c0_4 = arith.constant 0 : index
    %c0_5 = arith.constant 0 : index
    %13 = vector.load %arg3[%c0_4, %c0_5] : memref<8x96xf32, #tpu.memory_space<vmem>>, vector<8x96xf32>
    %cst_6 = arith.constant dense<0.000000e+00> : vector<8x96xf32>
    %14 = tpu.matmul %12, %13, %cst_6 {dimension_numbers = #tpu.dot_dimension_numbers<[1], [0], [0], [1], [0, 0, 1, 1], [], []>} : vector<8x8xf32>, vector<8x96xf32>, vector<8x96xf32> -> vector<8x96xf32>
    %c0_7 = arith.constant 0 : index
    %c0_8 = arith.constant 0 : index
    %15 = vector.load %arg4[%c0_7, %c0_8] : memref<8x96xf32, #tpu.memory_space<vmem>>, vector<8x96xf32>
    tpu.vector_store %arg4[%c0_7, %c0_8], %14 {strides = array<i32>} : memref<8x96xf32, #tpu.memory_space<vmem>>, vector<8x96xf32>,
    return
  }
  func.func @transform_0(%arg0: i32) -> (i32, i32) {
    %c0_i32 = arith.constant 0 : i32
    %c0_i32_0 = arith.constant 0 : i32
    return %arg0, %c0_i32 : i32, i32
  }
  func.func @transform_1(%arg0: i32) -> (i32, i32) {
    %c0_i32 = arith.constant 0 : i32
    %c0_i32_0 = arith.constant 0 : i32
    %c0_i32_1 = arith.constant 0 : i32
    return %c0_i32, %c0_i32_0 : i32, i32
  }
  func.func @transform_2(%arg0: i32) -> (i32, i32) {
    %c0_i32 = arith.constant 0 : i32
    %c0_i32_0 = arith.constant 0 : i32
    %c0_i32_1 = arith.constant 0 : i32
    return %c0_i32, %c0_i32_0 : i32, i32
  }
  func.func @transform_3(%arg0: i32) -> (i32, i32) {
    %c0_i32 = arith.constant 0 : i32
    %c0_i32_0 = arith.constant 0 : i32
    return %arg0, %c0_i32 : i32, i32
  }
}

</mosaic_0001>

<bundles_post_ra>
// kernel: tpu_custom_call.1
= control target key start
LH: loop header
LB: loop body
LE: loop exit
PB: predicated region body
PF: predicated region fallthrough
CT: control target
= control target key end

     0   :  { %v163_v1 = vmov 0   ;;  %v164_v2 = vmov 0.0   ;;  %s199_s0 = inlined_call_operand.vmem [shape: s32[8,1], index: 0, kind: input, shape index: {}]   ;;  %s200_s1 = inlined_call_operand.vmem [shape: s32[1,8], index: 1, kind: input, shape index: {}]   ;;  %s201_s2 = inlined_call_operand.vmem [shape: f32[8,96], index: 2, kind: input, shape index: {}]   ;;  %s202_s3 = inlined_call_operand.hbm [shape: f32[8,96], index: 3, kind: output, shape index: {}]  }
   0x1   :  { %v15_v0 = vld [vmem:[%s199_s0] sm:$0xff]  ;;  %138 = vset.pattern.permute.xlu0 %v163_v1  ;;  %129 = vmatprep.subr.mxu0 %v164_v2 }
   0x2   :  { %8 = vsyncpa [#allocation3], 0  ;;  %18 = vperm.xlu0 %138, %v15_v0   ;;  %v124_v3 = vld [vmem:[%s200_s1] ss:$0 sm:$0xff]  ;;  %vm27_vm0 = vcmask 64512   ;;  %vm165_vm2 = vmmov 0  }
   0x3   :  { %v34_v7 = vld [vmem:[%s201_s2] sm:$0xff]  ;;  %131 = vmatprep.mubr.msk.f32.mxu0 %vm165_vm2, %v164_v2  ;;  %s166_s0 = smov [#allocation2]   ;;  %vm108_vm3 = vcmask 785408  }
   0x4   :  { %130 = vmatpush3.msra.mxu0 %v34_v7  ;;  %s116_s1 = sshll.u32 %s166_s0, 4  ;;  %s117_s1 = int_to_ptr.vmem [resolvable:$true] %s116_s1 }
   0x5   :  { %s141_s18 = scalar_lea.vmem %s117_s1, 128  ;;  %p146_p1 = scmp.lt.s32.totalorder %s117_s1, %s117_s1 }
   0x6   :  { %p142_p0 = scmp.ne.s32.totalorder %s117_s1, %s141_s18  ;;  %p147_p2 = scmp.lt.s32.totalorder %s141_s18, %s141_s18 }
   0x8   :  { %p148_p3 = por %p147_p2, %p146_p1 }
   0xa   :  { %p149_p4 = pnand %p148_p3, %p142_p0 }
  0x7d   :  { %v19_v4 = vpop.permute.xlu0 %18 }
  0x7e   :  { %vm24_vm1 = vcmp.eq.s32.totalorder %v19_v4, %v124_v3 }
  0x7f   :  { %v125_v5 = vsel %vm24_vm1, 1.0, %v164_v2 }
  0x80   :  { %v28_v6 = vsel %vm27_vm0, %v125_v5, 0.0 }
  0x81   :  { %29 = vadd.xlane.f32.xlu0 %v28_v6 }
 0x10a   :  { %v30_v8 = vpop.xlane.xlu0 %29 }
 0x10b   :  { %139 = vrcp.f32 %v30_v8 }
 0x118   :  { %v140_v9 = vpop.eup %139 }
 0x119   :  { %v33_v10 = vmul.f32 %v140_v9, %v125_v5 }
 0x11b   :  { %132 = vmatmul.mubr.msk.f32.vlgmr.msra.gmra.mxu0 %vm27_vm0, %v33_v10 }
 0x1db   :  { %v104_v11 = vpop.f32.mrf.mxu0 }
 0x1dc   :  { %109 = vst.msk [vmem:[#allocation2] sm:$0xff] %vm108_vm3, %v104_v11 }
 0x1dd   :  { %v133_v12 = vpop.f32.mrf.mxu0 }
 0x1de   :  { %152 = shalt.err (!%p149_p4)
}
 0x1df   :  { %119 = dma.vmem_to_hbm [thread:$0]  %s117_s1, 128, %s202_s3, [#allocation3]  }
 0x1e0   :  { %161 = dma.done.wait [#allocation3], 128  }
 0x1e1   :  { %162 = vsyncadd [#allocation3], 4294967168 }
 0x1e2   :  { %123 = vsyncpa [#allocation3], 1 }

</bundles_post_ra>
